<compile_context>
chip_gen: v6e
topology: v6e:2x2x1
jax: 0.10.0
libtpu: 0.0.40
codegen_flags: <defaults>
</compile_context>

<pallas_src>
import numpy as np
import jax
import jax.numpy as jnp
from jax import lax
from jax.experimental import pallas as pl
from jax.experimental.pallas import tpu as pltpu

# ----------------------------- configuration --------------------------------
B = 2            # batch
L = 16           # sequence length
D_MODEL = 32     # d_model
N_LAYERS = 2     # layer_num
DECOMP_KS = 7    # decomp_ks (moving-average kernel size)
TOP_K = 4        # top_k_freq
EPS = 1e-5       # LayerNorm eps
F_BINS = L // 2 + 1                  # rfft bins (9)
F_PAD = ((F_BINS + 7) // 8) * 8      # padded bin count (16) -> aligned slices
BC = B * D_MODEL                     # folded lane width (64)


# ------------------------- static matrix builders ---------------------------
def build_moving_average_matrix(length, ks):
    """[L, L] matrix M such that (M @ x) == conv1d(reflect_pad(x), ones/ks)."""
    pad = ks // 2
    assert pad < length
    m = np.zeros((length, length), dtype=np.float32)
    ext = []
    for j in range(-pad, length + pad):
        if j < 0:
            src = -j
        elif j >= length:
            src = 2 * length - 2 - j
        else:
            src = j
        ext.append(src)
    for l in range(length):
        for t in range(ks):
            m[l, ext[l + t]] += 1.0 / ks
    return m


def build_dft_matrices(length):
    """Real/imag rfft matrices and irfft (n=length) reconstruction matrices."""
    fbins = length // 2 + 1
    n = np.arange(length)
    k = np.arange(fbins)
    ang = 2.0 * np.pi * np.outer(k, n) / length           # [F, L]
    wre = np.cos(ang).astype(np.float32)                  # Re part of rfft
    wim = (-np.sin(ang)).astype(np.float32)               # Im part of rfft
    c = np.full((fbins,), 2.0, dtype=np.float64)
    c[0] = 1.0
    if length % 2 == 0:
        c[-1] = 1.0
    ang2 = 2.0 * np.pi * np.outer(n, k) / length          # [L, F]
    are = (np.cos(ang2) * c[None, :] / length).astype(np.float32)
    aim = (-np.sin(ang2) * c[None, :] / length).astype(np.float32)
    # irfft ignores imaginary parts of DC / Nyquist bins
    aim[:, 0] = 0.0
    if length % 2 == 0:
        aim[:, -1] = 0.0
    return wre, wim, are, aim


def build_stacked_dft(length, fpad):
    """Stacked (Re;Im) rfft matrix [2*fpad, L] and (Re|Im) irfft matrix [L, 2*fpad]."""
    wre, wim, are, aim = build_dft_matrices(length)
    fb = length // 2 + 1
    wcat = np.zeros((2 * fpad, length), dtype=np.float32)
    wcat[:fb] = wre
    wcat[fpad:fpad + fb] = wim
    acat = np.zeros((length, 2 * fpad), dtype=np.float32)
    acat[:, :fb] = are
    acat[:, fpad:fpad + fb] = aim
    return wcat, acat


def block_diag(mat, copies):
    """Block-diagonal replication of `mat` `copies` times."""
    r, c = mat.shape
    out = np.zeros((copies * r, copies * c), dtype=np.float32)
    for i in range(copies):
        out[i * r:(i + 1) * r, i * c:(i + 1) * c] = mat
    return out


# ------------------------------- Pallas kernel -------------------------------
def fedformer_kernel(x_ref, ma_ref, wcat_ref, acat_ref, wbd_ref, mavg_ref,
                     par_ref, out_ref):
    x = x_ref[...]                                   # [L, B*C]
    mavg = mavg_ref[...]                             # [B*C, B*C] block-diag ones/C
    params = par_ref[...]                            # [3*N_LAYERS+2, B*C]
    wcat = wcat_ref[...]                             # [2*F_PAD, L]
    acat = acat_ref[...]                             # [L, 2*F_PAD]

    # SeriesDecomposition (moving average via matmul; reflect padding baked in).
    trend_ma = jnp.dot(ma_ref[...], x, preferred_element_type=jnp.float32)
    # Reproduce the module's swapped unpacking (seasonal_init <- trend component).
    seasonal = trend_ma
    trend = x - trend_ma

    def group_layernorm(v, gamma_row, beta_row):
        # mean / variance over each d_model group of the folded lane axis,
        # broadcast back via the block-diagonal averaging matmul (stays [L, B*C]).
        mu = jnp.dot(v, mavg, preferred_element_type=jnp.float32)
        d = v - mu
        var = jnp.dot(d * d, mavg, preferred_element_type=jnp.float32)
        return d * lax.rsqrt(var + EPS) * gamma_row + beta_row

    for layer in range(N_LAYERS):
        # ---- FourierBlock: rfft -> top-k magnitude filter -> irfft ----
        # Fused Re/Im rfft: one matmul producing [2*F_PAD, B*C].
        xreim = jnp.dot(wcat, seasonal, preferred_element_type=jnp.float32)
        xre = xreim[:F_PAD]                          # aligned sublane slice
        xim = xreim[F_PAD:]
        mag2 = xre * xre + xim * xim                 # squared |X|: same ranking

        # Iterative top-k: after TOP_K max-extractions `kth` is the TOP_K-th
        # largest value per column; keep everything >= kth (reference semantics).
        work = mag2
        kth = mag2[0:1, :]
        for _ in range(TOP_K):
            kth = jnp.max(work, axis=0, keepdims=True)        # [1, B*C]
            work = jnp.where(work >= kth, -jnp.inf, work)
        mask = (mag2 >= kth).astype(jnp.float32)              # [F_PAD, B*C]

        # Fused Re/Im irfft: one matmul back to the time domain.
        xreim_f = xreim * jnp.concatenate([mask, mask], axis=0)
        freq_seasonal = jnp.dot(acat, xreim_f,
                                preferred_element_type=jnp.float32)   # [L, B*C]

        # ---- Linear (block-diagonal over batch copies) + dropout(identity) ----
        # TODO(synk): training-mode dropout RNG is not reproducible bit-exactly.
        y = jnp.dot(freq_seasonal, wbd_ref[layer],
                    preferred_element_type=jnp.float32)
        y = y + params[3 * layer:3 * layer + 1, :]

        # ---- residual + LayerNorm over each d_model group ----
        seasonal = group_layernorm(seasonal + y,
                                   params[3 * layer + 1:3 * layer + 2, :],
                                   params[3 * layer + 2:3 * layer + 3, :])

    # final combine + LayerNorm
    final = seasonal + trend
    out_ref[...] = group_layernorm(final,
                                   params[3 * N_LAYERS:3 * N_LAYERS + 1, :],
                                   params[3 * N_LAYERS + 1:3 * N_LAYERS + 2, :])


def fedformer_encoder(xf, ma, wcat, acat, wbd, mavg, params):
    def full_spec(arr):
        nd = arr.ndim
        return pl.BlockSpec(arr.shape, lambda i, _nd=nd: (0,) * _nd)

    args = (xf, ma, wcat, acat, wbd, mavg, params)
    return pl.pallas_call(
        fedformer_kernel,
        out_shape=jax.ShapeDtypeStruct(xf.shape, jnp.float32),
        grid_spec=pltpu.PrefetchScalarGridSpec(
            num_scalar_prefetch=0,
            grid=(1,),                     # whole batch folded into lanes
            in_specs=[full_spec(a) for a in args],
            out_specs=full_spec(xf),
        ),
        compiler_params=pltpu.CompilerParams(
            dimension_semantics=("arbitrary",)),
    )(*args)


# --------------------------- pure-JAX reference ------------------------------
def reference_forward(x, ma, w, bvec, gamma, beta, gfin, bfin):
    trend_ma = jnp.einsum('lm,bmc->blc', ma, x)
    seasonal = trend_ma          # swapped unpacking, as in the PyTorch module
    trend = x - trend_ma
    for i in range(N_LAYERS):
        fx = jnp.fft.rfft(seasonal, axis=1)               # [B, F, C] complex
        mag = jnp.abs(fx)
        kth = jnp.sort(mag, axis=1)[:, -TOP_K, :][:, None, :]
        mask = (mag >= kth).astype(seasonal.dtype)
        filt = jnp.fft.irfft(fx * mask, n=L, axis=1).astype(jnp.float32)
        y = jnp.einsum('blc,oc->blo', filt, w[i]) + bvec[i][None]
        resid = seasonal + y
        mu = resid.mean(-1, keepdims=True)
        var = ((resid - mu) ** 2).mean(-1, keepdims=True)
        seasonal = (resid - mu) / jnp.sqrt(var + EPS) * gamma[i] + beta[i]
    final = seasonal + trend
    mu = final.mean(-1, keepdims=True)
    var = ((final - mu) ** 2).mean(-1, keepdims=True)
    return (final - mu) / jnp.sqrt(var + EPS) * gfin + bfin


# ----------------------------------- main ------------------------------------
if __name__ == "__main__":
    key = jax.random.PRNGKey(0)
    keys = jax.random.split(key, 8)

    x = jax.random.normal(keys[0], (B, L, D_MODEL), dtype=jnp.float32)

    # deterministic synthetic parameters (shapes from the module __init__)
    w_lin = jax.random.normal(keys[1], (N_LAYERS, D_MODEL, D_MODEL),
                              dtype=jnp.float32) / jnp.sqrt(D_MODEL)   # (out,in)
    b_lin = 0.1 * jax.random.normal(keys[2], (N_LAYERS, 1, D_MODEL), jnp.float32)
    gamma = 1.0 + 0.1 * jax.random.normal(keys[3], (N_LAYERS, 1, D_MODEL), jnp.float32)
    beta = 0.1 * jax.random.normal(keys[4], (N_LAYERS, 1, D_MODEL), jnp.float32)
    gfin = 1.0 + 0.1 * jax.random.normal(keys[5], (1, D_MODEL), jnp.float32)
    bfin = 0.1 * jax.random.normal(keys[6], (1, D_MODEL), jnp.float32)

    # --- static matrices / packed parameters for the kernel -------------------
    ma = jnp.asarray(build_moving_average_matrix(L, DECOMP_KS))
    wcat_np, acat_np = build_stacked_dft(L, F_PAD)
    wcat, acat = jnp.asarray(wcat_np), jnp.asarray(acat_np)

    w_np = np.asarray(w_lin)
    wbd = jnp.asarray(np.stack(
        [block_diag(w_np[i].T, B) for i in range(N_LAYERS)], axis=0))   # x @ W^T
    mavg = jnp.asarray(block_diag(
        np.full((D_MODEL, D_MODEL), 1.0 / D_MODEL, dtype=np.float32), B))

    def tile_row(p):   # [D_MODEL] -> [B*C] (repeat per batch copy in lane order)
        return np.tile(np.asarray(p, dtype=np.float32).reshape(-1), B)

    rows = []
    for i in range(N_LAYERS):
        rows += [tile_row(b_lin[i, 0]), tile_row(gamma[i, 0]), tile_row(beta[i, 0])]
    rows += [tile_row(gfin[0]), tile_row(bfin[0])]
    params = jnp.asarray(np.stack(rows, axis=0))                        # [8, B*C]

    # fold batch into the lane axis: [B, L, C] -> [L, B*C]
    xf = jnp.transpose(x, (1, 0, 2)).reshape(L, BC)

    out_f = fedformer_encoder(xf, ma, wcat, acat, wbd, mavg, params)
    out = jnp.transpose(out_f.reshape(L, B, D_MODEL), (1, 0, 2))        # [B, L, C]
    out = jax.block_until_ready(out)

    ref = jax.block_until_ready(
        reference_forward(x, ma, w_lin, b_lin, gamma, beta, gfin, bfin))

    assert out.shape == (B, L, D_MODEL)
    assert bool(jnp.all(jnp.isfinite(out)))
    np.testing.assert_allclose(np.asarray(out), np.asarray(ref),
                               rtol=5e-3, atol=5e-3)

    print("KERNEL_OK")
</pallas_src>

<mosaic_0001>
module attributes {stable_mosaic.version = 11 : i64} {
  func.func @fedformer_kernel(%arg0: i32, %arg1: memref<16x64xf32, #tpu.memory_space<vmem>>, %arg2: memref<16x16xf32, #tpu.memory_space<vmem>>, %arg3: memref<32x16xf32, #tpu.memory_space<vmem>>, %arg4: memref<16x32xf32, #tpu.memory_space<vmem>>, %arg5: memref<2x64x64xf32, #tpu.memory_space<vmem>>, %arg6: memref<64x64xf32, #tpu.memory_space<vmem>>, %arg7: memref<8x64xf32, #tpu.memory_space<vmem>>, %arg8: memref<16x64xf32, #tpu.memory_space<vmem>>) attributes {dimension_semantics = [#tpu.dimension_semantics<arbitrary>], iteration_bounds = array<i64: 1>, scalar_prefetch = 0 : i64, scratch_operands = 0 : i64, tpu.core_type = #tpu.core_type<tc>, window_params = [{pipeline_mode = #tpu.pipeline_mode<synchronous>, transform_indices = @transform_0, window_bounds = array<i64: 16, 64>}, {pipeline_mode = #tpu.pipeline_mode<synchronous>, transform_indices = @transform_1, window_bounds = array<i64: 16, 16>}, {pipeline_mode = #tpu.pipeline_mode<synchronous>, transform_indices = @transform_2, window_bounds = array<i64: 32, 16>}, {pipeline_mode = #tpu.pipeline_mode<synchronous>, transform_indices = @transform_3, window_bounds = array<i64: 16, 32>}, {pipeline_mode = #tpu.pipeline_mode<synchronous>, transform_indices = @transform_4, window_bounds = array<i64: 2, 64, 64>}, {pipeline_mode = #tpu.pipeline_mode<synchronous>, transform_indices = @transform_5, window_bounds = array<i64: 64, 64>}, {pipeline_mode = #tpu.pipeline_mode<synchronous>, transform_indices = @transform_6, window_bounds = array<i64: 8, 64>}, {pipeline_mode = #tpu.pipeline_mode<synchronous>, transform_indices = @transform_7, window_bounds = array<i64: 16, 64>}]} {
    %c0 = arith.constant 0 : index
    %c0_0 = arith.constant 0 : index
    %0 = vector.load %arg1[%c0, %c0_0] : memref<16x64xf32, #tpu.memory_space<vmem>>, vector<16x64xf32>
    %c0_1 = arith.constant 0 : index
    %c0_2 = arith.constant 0 : index
    %1 = vector.load %arg6[%c0_1, %c0_2] : memref<64x64xf32, #tpu.memory_space<vmem>>, vector<64x64xf32>
    %c0_3 = arith.constant 0 : index
    %c0_4 = arith.constant 0 : index
    %2 = vector.load %arg7[%c0_3, %c0_4] : memref<8x64xf32, #tpu.memory_space<vmem>>, vector<8x64xf32>
    %c0_5 = arith.constant 0 : index
    %c0_6 = arith.constant 0 : index
    %3 = vector.load %arg3[%c0_5, %c0_6] : memref<32x16xf32, #tpu.memory_space<vmem>>, vector<32x16xf32>
    %c0_7 = arith.constant 0 : index
    %c0_8 = arith.constant 0 : index
    %4 = vector.load %arg4[%c0_7, %c0_8] : memref<16x32xf32, #tpu.memory_space<vmem>>, vector<16x32xf32>
    %c0_9 = arith.constant 0 : index
    %c0_10 = arith.constant 0 : index
    %5 = vector.load %arg2[%c0_9, %c0_10] : memref<16x16xf32, #tpu.memory_space<vmem>>, vector<16x16xf32>
    %cst = arith.constant dense<0.000000e+00> : vector<16x64xf32>
    %6 = tpu.matmul %5, %0, %cst {dimension_numbers = #tpu.dot_dimension_numbers<[1], [0], [0], [1], [0, 0, 1, 1], [], []>} : vector<16x16xf32>, vector<16x64xf32>, vector<16x64xf32> -> vector<16x64xf32>
    %7 = arith.subf %0, %6 : vector<16x64xf32>
    %cst_11 = arith.constant dense<0.000000e+00> : vector<32x64xf32>
    %8 = tpu.matmul %3, %6, %cst_11 {dimension_numbers = #tpu.dot_dimension_numbers<[1], [0], [0], [1], [0, 0, 1, 1], [], []>} : vector<32x16xf32>, vector<16x64xf32>, vector<32x64xf32> -> vector<32x64xf32>
    %9 = vector.extract_strided_slice %8 {offsets = [0, 0], sizes = [16, 64], strides = [1, 1]} : vector<32x64xf32> to vector<16x64xf32>
    %10 = vector.extract_strided_slice %8 {offsets = [16, 0], sizes = [16, 64], strides = [1, 1]} : vector<32x64xf32> to vector<16x64xf32>
    %11 = arith.mulf %9, %9 : vector<16x64xf32>
    %12 = arith.mulf %10, %10 : vector<16x64xf32>
    %13 = arith.addf %11, %12 : vector<16x64xf32>
    %cst_12 = arith.constant dense<0xFF800000> : vector<64xf32>
    %14 = vector.multi_reduction <maximumf>, %13, %cst_12 [0] : vector<16x64xf32> to vector<64xf32>
    %15 = vector.shape_cast %14 : vector<64xf32> to vector<1x64xf32>
    %16 = vector.broadcast %15 : vector<1x64xf32> to vector<16x64xf32>
    %17 = arith.cmpf oge, %13, %16 : vector<16x64xf32>
    %cst_13 = arith.constant 0xFF800000 : f32
    %18 = vector.broadcast %cst_13 : f32 to vector<16x64xf32>
    %19 = arith.select %17, %18, %13 : vector<16x64xi1>, vector<16x64xf32>
    %cst_14 = arith.constant dense<0xFF800000> : vector<64xf32>
    %20 = vector.multi_reduction <maximumf>, %19, %cst_14 [0] : vector<16x64xf32> to vector<64xf32>
    %21 = vector.shape_cast %20 : vector<64xf32> to vector<1x64xf32>
    %22 = vector.broadcast %21 : vector<1x64xf32> to vector<16x64xf32>
    %23 = arith.cmpf oge, %19, %22 : vector<16x64xf32>
    %cst_15 = arith.constant 0xFF800000 : f32
    %24 = vector.broadcast %cst_15 : f32 to vector<16x64xf32>
    %25 = arith.select %23, %24, %19 : vector<16x64xi1>, vector<16x64xf32>
    %cst_16 = arith.constant dense<0xFF800000> : vector<64xf32>
    %26 = vector.multi_reduction <maximumf>, %25, %cst_16 [0] : vector<16x64xf32> to vector<64xf32>
    %27 = vector.shape_cast %26 : vector<64xf32> to vector<1x64xf32>
    %28 = vector.broadcast %27 : vector<1x64xf32> to vector<16x64xf32>
    %29 = arith.cmpf oge, %25, %28 : vector<16x64xf32>
    %cst_17 = arith.constant 0xFF800000 : f32
    %30 = vector.broadcast %cst_17 : f32 to vector<16x64xf32>
    %31 = arith.select %29, %30, %25 : vector<16x64xi1>, vector<16x64xf32>
    %cst_18 = arith.constant dense<0xFF800000> : vector<64xf32>
    %32 = vector.multi_reduction <maximumf>, %31, %cst_18 [0] : vector<16x64xf32> to vector<64xf32>
    %33 = vector.shape_cast %32 : vector<64xf32> to vector<1x64xf32>
    %34 = vector.broadcast %33 : vector<1x64xf32> to vector<16x64xf32>
    %35 = arith.cmpf oge, %13, %34 : vector<16x64xf32>
    %36 = arith.extui %35 : vector<16x64xi1> to vector<16x64xi32>
    %37 = arith.sitofp %36 : vector<16x64xi32> to vector<16x64xf32>
    %38 = tpu.concatenate %37, %37 in 0 : vector<16x64xf32>, vector<16x64xf32> -> vector<32x64xf32>
    %39 = arith.mulf %8, %38 : vector<32x64xf32>
    %cst_19 = arith.constant dense<0.000000e+00> : vector<16x64xf32>
    %40 = tpu.matmul %4, %39, %cst_19 {dimension_numbers = #tpu.dot_dimension_numbers<[1], [0], [0], [1], [0, 0, 1, 1], [], []>} : vector<16x32xf32>, vector<32x64xf32>, vector<16x64xf32> -> vector<16x64xf32>
    %c0_20 = arith.constant 0 : index
    %c0_21 = arith.constant 0 : index
    %c0_22 = arith.constant 0 : index
    %41 = vector.load %arg5[%c0_20, %c0_21, %c0_22] : memref<2x64x64xf32, #tpu.memory_space<vmem>>, vector<1x64x64xf32>
    %42 = vector.shape_cast %41 : vector<1x64x64xf32> to vector<64x64xf32>
    %cst_23 = arith.constant dense<0.000000e+00> : vector<16x64xf32>
    %43 = tpu.matmul %40, %42, %cst_23 {dimension_numbers = #tpu.dot_dimension_numbers<[1], [0], [0], [1], [0, 0, 1, 1], [], []>} : vector<16x64xf32>, vector<64x64xf32>, vector<16x64xf32> -> vector<16x64xf32>
    %44 = vector.extract_strided_slice %2 {offsets = [0, 0], sizes = [1, 64], strides = [1, 1]} : vector<8x64xf32> to vector<1x64xf32>
    %45 = vector.broadcast %44 : vector<1x64xf32> to vector<16x64xf32>
    %46 = arith.addf %43, %45 : vector<16x64xf32>
    %47 = arith.addf %6, %46 : vector<16x64xf32>
    %48 = vector.extract_strided_slice %2 {offsets = [1, 0], sizes = [1, 64], strides = [1, 1]} : vector<8x64xf32> to vector<1x64xf32>
    %49 = vector.extract_strided_slice %2 {offsets = [2, 0], sizes = [1, 64], strides = [1, 1]} : vector<8x64xf32> to vector<1x64xf32>
    %cst_24 = arith.constant dense<0.000000e+00> : vector<16x64xf32>
    %50 = tpu.matmul %47, %1, %cst_24 {dimension_numbers = #tpu.dot_dimension_numbers<[1], [0], [0], [1], [0, 0, 1, 1], [], []>} : vector<16x64xf32>, vector<64x64xf32>, vector<16x64xf32> -> vector<16x64xf32>
    %51 = arith.subf %47, %50 : vector<16x64xf32>
    %52 = arith.mulf %51, %51 : vector<16x64xf32>
    %cst_25 = arith.constant dense<0.000000e+00> : vector<16x64xf32>
    %53 = tpu.matmul %52, %1, %cst_25 {dimension_numbers = #tpu.dot_dimension_numbers<[1], [0], [0], [1], [0, 0, 1, 1], [], []>} : vector<16x64xf32>, vector<64x64xf32>, vector<16x64xf32> -> vector<16x64xf32>
    %cst_26 = arith.constant 9.99999974E-6 : f32
    %54 = vector.broadcast %cst_26 : f32 to vector<16x64xf32>
    %55 = arith.addf %53, %54 : vector<16x64xf32>
    %56 = math.rsqrt %55 : vector<16x64xf32>
    %57 = arith.mulf %51, %56 : vector<16x64xf32>
    %58 = vector.broadcast %48 : vector<1x64xf32> to vector<16x64xf32>
    %59 = arith.mulf %57, %58 : vector<16x64xf32>
    %60 = vector.broadcast %49 : vector<1x64xf32> to vector<16x64xf32>
    %61 = arith.addf %59, %60 : vector<16x64xf32>
    %cst_27 = arith.constant dense<0.000000e+00> : vector<32x64xf32>
    %62 = tpu.matmul %3, %61, %cst_27 {dimension_numbers = #tpu.dot_dimension_numbers<[1], [0], [0], [1], [0, 0, 1, 1], [], []>} : vector<32x16xf32>, vector<16x64xf32>, vector<32x64xf32> -> vector<32x64xf32>
    %63 = vector.extract_strided_slice %62 {offsets = [0, 0], sizes = [16, 64], strides = [1, 1]} : vector<32x64xf32> to vector<16x64xf32>
    %64 = vector.extract_strided_slice %62 {offsets = [16, 0], sizes = [16, 64], strides = [1, 1]} : vector<32x64xf32> to vector<16x64xf32>
    %65 = arith.mulf %63, %63 : vector<16x64xf32>
    %66 = arith.mulf %64, %64 : vector<16x64xf32>
    %67 = arith.addf %65, %66 : vector<16x64xf32>
    %cst_28 = arith.constant dense<0xFF800000> : vector<64xf32>
    %68 = vector.multi_reduction <maximumf>, %67, %cst_28 [0] : vector<16x64xf32> to vector<64xf32>
    %69 = vector.shape_cast %68 : vector<64xf32> to vector<1x64xf32>
    %70 = vector.broadcast %69 : vector<1x64xf32> to vector<16x64xf32>
    %71 = arith.cmpf oge, %67, %70 : vector<16x64xf32>
    %cst_29 = arith.constant 0xFF800000 : f32
    %72 = vector.broadcast %cst_29 : f32 to vector<16x64xf32>
    %73 = arith.select %71, %72, %67 : vector<16x64xi1>, vector<16x64xf32>
    %cst_30 = arith.constant dense<0xFF800000> : vector<64xf32>
    %74 = vector.multi_reduction <maximumf>, %73, %cst_30 [0] : vector<16x64xf32> to vector<64xf32>
    %75 = vector.shape_cast %74 : vector<64xf32> to vector<1x64xf32>
    %76 = vector.broadcast %75 : vector<1x64xf32> to vector<16x64xf32>
    %77 = arith.cmpf oge, %73, %76 : vector<16x64xf32>
    %cst_31 = arith.constant 0xFF800000 : f32
    %78 = vector.broadcast %cst_31 : f32 to vector<16x64xf32>
    %79 = arith.select %77, %78, %73 : vector<16x64xi1>, vector<16x64xf32>
    %cst_32 = arith.constant dense<0xFF800000> : vector<64xf32>
    %80 = vector.multi_reduction <maximumf>, %79, %cst_32 [0] : vector<16x64xf32> to vector<64xf32>
    %81 = vector.shape_cast %80 : vector<64xf32> to vector<1x64xf32>
    %82 = vector.broadcast %81 : vector<1x64xf32> to vector<16x64xf32>
    %83 = arith.cmpf oge, %79, %82 : vector<16x64xf32>
    %cst_33 = arith.constant 0xFF800000 : f32
    %84 = vector.broadcast %cst_33 : f32 to vector<16x64xf32>
    %85 = arith.select %83, %84, %79 : vector<16x64xi1>, vector<16x64xf32>
    %cst_34 = arith.constant dense<0xFF800000> : vector<64xf32>
    %86 = vector.multi_reduction <maximumf>, %85, %cst_34 [0] : vector<16x64xf32> to vector<64xf32>
    %87 = vector.shape_cast %86 : vector<64xf32> to vector<1x64xf32>
    %88 = vector.broadcast %87 : vector<1x64xf32> to vector<16x64xf32>
    %89 = arith.cmpf oge, %67, %88 : vector<16x64xf32>
    %90 = arith.extui %89 : vector<16x64xi1> to vector<16x64xi32>
    %91 = arith.sitofp %90 : vector<16x64xi32> to vector<16x64xf32>
    %92 = tpu.concatenate %91, %91 in 0 : vector<16x64xf32>, vector<16x64xf32> -> vector<32x64xf32>
    %93 = arith.mulf %62, %92 : vector<32x64xf32>
    %cst_35 = arith.constant dense<0.000000e+00> : vector<16x64xf32>
    %94 = tpu.matmul %4, %93, %cst_35 {dimension_numbers = #tpu.dot_dimension_numbers<[1], [0], [0], [1], [0, 0, 1, 1], [], []>} : vector<16x32xf32>, vector<32x64xf32>, vector<16x64xf32> -> vector<16x64xf32>
    %c1 = arith.constant 1 : index
    %c0_36 = arith.constant 0 : index
    %c0_37 = arith.constant 0 : index
    %95 = vector.load %arg5[%c1, %c0_36, %c0_37] : memref<2x64x64xf32, #tpu.memory_space<vmem>>, vector<1x64x64xf32>
    %96 = vector.shape_cast %95 : vector<1x64x64xf32> to vector<64x64xf32>
    %cst_38 = arith.constant dense<0.000000e+00> : vector<16x64xf32>
    %97 = tpu.matmul %94, %96, %cst_38 {dimension_numbers = #tpu.dot_dimension_numbers<[1], [0], [0], [1], [0, 0, 1, 1], [], []>} : vector<16x64xf32>, vector<64x64xf32>, vector<16x64xf32> -> vector<16x64xf32>
    %98 = vector.extract_strided_slice %2 {offsets = [3, 0], sizes = [1, 64], strides = [1, 1]} : vector<8x64xf32> to vector<1x64xf32>
    %99 = vector.broadcast %98 : vector<1x64xf32> to vector<16x64xf32>
    %100 = arith.addf %97, %99 : vector<16x64xf32>
    %101 = arith.addf %61, %100 : vector<16x64xf32>
    %102 = vector.extract_strided_slice %2 {offsets = [4, 0], sizes = [1, 64], strides = [1, 1]} : vector<8x64xf32> to vector<1x64xf32>
    %103 = vector.extract_strided_slice %2 {offsets = [5, 0], sizes = [1, 64], strides = [1, 1]} : vector<8x64xf32> to vector<1x64xf32>
    %cst_39 = arith.constant dense<0.000000e+00> : vector<16x64xf32>
    %104 = tpu.matmul %101, %1, %cst_39 {dimension_numbers = #tpu.dot_dimension_numbers<[1], [0], [0], [1], [0, 0, 1, 1], [], []>} : vector<16x64xf32>, vector<64x64xf32>, vector<16x64xf32> -> vector<16x64xf32>
    %105 = arith.subf %101, %104 : vector<16x64xf32>
    %106 = arith.mulf %105, %105 : vector<16x64xf32>
    %cst_40 = arith.constant dense<0.000000e+00> : vector<16x64xf32>
    %107 = tpu.matmul %106, %1, %cst_40 {dimension_numbers = #tpu.dot_dimension_numbers<[1], [0], [0], [1], [0, 0, 1, 1], [], []>} : vector<16x64xf32>, vector<64x64xf32>, vector<16x64xf32> -> vector<16x64xf32>
    %cst_41 = arith.constant 9.99999974E-6 : f32
    %108 = vector.broadcast %cst_41 : f32 to vector<16x64xf32>
    %109 = arith.addf %107, %108 : vector<16x64xf32>
    %110 = math.rsqrt %109 : vector<16x64xf32>
    %111 = arith.mulf %105, %110 : vector<16x64xf32>
    %112 = vector.broadcast %102 : vector<1x64xf32> to vector<16x64xf32>
    %113 = arith.mulf %111, %112 : vector<16x64xf32>
    %114 = vector.broadcast %103 : vector<1x64xf32> to vector<16x64xf32>
    %115 = arith.addf %113, %114 : vector<16x64xf32>
    %116 = arith.addf %115, %7 : vector<16x64xf32>
    %117 = vector.extract_strided_slice %2 {offsets = [6, 0], sizes = [1, 64], strides = [1, 1]} : vector<8x64xf32> to vector<1x64xf32>
    %118 = vector.extract_strided_slice %2 {offsets = [7, 0], sizes = [1, 64], strides = [1, 1]} : vector<8x64xf32> to vector<1x64xf32>
    %cst_42 = arith.constant dense<0.000000e+00> : vector<16x64xf32>
    %119 = tpu.matmul %116, %1, %cst_42 {dimension_numbers = #tpu.dot_dimension_numbers<[1], [0], [0], [1], [0, 0, 1, 1], [], []>} : vector<16x64xf32>, vector<64x64xf32>, vector<16x64xf32> -> vector<16x64xf32>
    %120 = arith.subf %116, %119 : vector<16x64xf32>
    %121 = arith.mulf %120, %120 : vector<16x64xf32>
    %cst_43 = arith.constant dense<0.000000e+00> : vector<16x64xf32>
    %122 = tpu.matmul %121, %1, %cst_43 {dimension_numbers = #tpu.dot_dimension_numbers<[1], [0], [0], [1], [0, 0, 1, 1], [], []>} : vector<16x64xf32>, vector<64x64xf32>, vector<16x64xf32> -> vector<16x64xf32>
    %cst_44 = arith.constant 9.99999974E-6 : f32
    %123 = vector.broadcast %cst_44 : f32 to vector<16x64xf32>
    %124 = arith.addf %122, %123 : vector<16x64xf32>
    %125 = math.rsqrt %124 : vector<16x64xf32>
    %126 = arith.mulf %120, %125 : vector<16x64xf32>
    %127 = vector.broadcast %117 : vector<1x64xf32> to vector<16x64xf32>
    %128 = arith.mulf %126, %127 : vector<16x64xf32>
    %129 = vector.broadcast %118 : vector<1x64xf32> to vector<16x64xf32>
    %130 = arith.addf %128, %129 : vector<16x64xf32>
    %c0_45 = arith.constant 0 : index
    %c0_46 = arith.constant 0 : index
    %131 = vector.load %arg8[%c0_45, %c0_46] : memref<16x64xf32, #tpu.memory_space<vmem>>, vector<16x64xf32>
    tpu.vector_store %arg8[%c0_45, %c0_46], %130 {strides = array<i32>} : memref<16x64xf32, #tpu.memory_space<vmem>>, vector<16x64xf32>,
    return
  }
  func.func @transform_0(%arg0: i32) -> (i32, i32) {
    %c0_i32 = arith.constant 0 : i32
    %c0_i32_0 = arith.constant 0 : i32
    %c0_i32_1 = arith.constant 0 : i32
    return %c0_i32, %c0_i32_0 : i32, i32
  }
  func.func @transform_1(%arg0: i32) -> (i32, i32) {
    %c0_i32 = arith.constant 0 : i32
    %c0_i32_0 = arith.constant 0 : i32
    %c0_i32_1 = arith.constant 0 : i32
    return %c0_i32, %c0_i32_0 : i32, i32
  }
  func.func @transform_2(%arg0: i32) -> (i32, i32) {
    %c0_i32 = arith.constant 0 : i32
    %c0_i32_0 = arith.constant 0 : i32
    %c0_i32_1 = arith.constant 0 : i32
    return %c0_i32, %c0_i32_0 : i32, i32
  }
  func.func @transform_3(%arg0: i32) -> (i32, i32) {
    %c0_i32 = arith.constant 0 : i32
    %c0_i32_0 = arith.constant 0 : i32
    %c0_i32_1 = arith.constant 0 : i32
    return %c0_i32, %c0_i32_0 : i32, i32
  }
  func.func @transform_4(%arg0: i32) -> (i32, i32, i32) {
    %c0_i32 = arith.constant 0 : i32
    %c0_i32_0 = arith.constant 0 : i32
    %c0_i32_1 = arith.constant 0 : i32
    %c0_i32_2 = arith.constant 0 : i32
    return %c0_i32, %c0_i32_0, %c0_i32_1 : i32, i32, i32
  }
  func.func @transform_5(%arg0: i32) -> (i32, i32) {
    %c0_i32 = arith.constant 0 : i32
    %c0_i32_0 = arith.constant 0 : i32
    %c0_i32_1 = arith.constant 0 : i32
    return %c0_i32, %c0_i32_0 : i32, i32
  }
  func.func @transform_6(%arg0: i32) -> (i32, i32) {
    %c0_i32 = arith.constant 0 : i32
    %c0_i32_0 = arith.constant 0 : i32
    %c0_i32_1 = arith.constant 0 : i32
    return %c0_i32, %c0_i32_0 : i32, i32
  }
  func.func @transform_7(%arg0: i32) -> (i32, i32) {
    %c0_i32 = arith.constant 0 : i32
    %c0_i32_0 = arith.constant 0 : i32
    %c0_i32_1 = arith.constant 0 : i32
    return %c0_i32, %c0_i32_0 : i32, i32
  }
}

</mosaic_0001>

<bundles_post_ra>
// kernel: tpu_custom_call.1
= control target key start
LH: loop header
LB: loop body
LE: loop exit
PB: predicated region body
PF: predicated region fallthrough
CT: control target
= control target key end

     0   :  { %12 = vsyncpa [#allocation3], 0  ;;  %s2169_s0 = inlined_call_operand.vmem [shape: f32[16,64], index: 0, kind: input, shape index: {}]   ;;  %s2170_s1 = inlined_call_operand.vmem [shape: f32[16,16], index: 1, kind: input, shape index: {}]   ;;  %s2171_s2 = inlined_call_operand.vmem [shape: f32[32,16], index: 2, kind: input, shape index: {}]   ;;  %s2172_s3 = inlined_call_operand.vmem [shape: f32[16,32], index: 3, kind: input, shape index: {}]   ;;  %s2173_s4 = inlined_call_operand.hbm [shape: f32[2,64,64], index: 4, kind: input, shape index: {}]   ;;  %s2174_s5 = inlined_call_operand.hbm [shape: f32[64,64], index: 5, kind: input, shape index: {}]   ;;  %s2175_s6 = inlined_call_operand.vmem [shape: f32[8,64], index: 6, kind: input, shape index: {}]   ;;  %s2176_s7 = inlined_call_operand.hbm [shape: f32[16,64], index: 7, kind: output, shape index: {}]  }
   0x1   :  { %13 = vsyncpa [#allocation6], 0 }
   0x2   :  { %14 = vsyncpa [#allocation4], 0  ;;  %s1812_s24 = smov [#allocation2]  }
   0x3   :  { %s28_s25 = sshll.u32 %s1812_s24, 4  ;;  %s29_s25 = int_to_ptr.vmem [resolvable:$true] %s28_s25 }
   0x4   :  { %s1754_s26 = scalar_lea.vmem %s29_s25, 2048  ;;  %p1759_p1 = scmp.lt.s32.totalorder %s29_s25, %s29_s25 }
   0x5   :  { %p1755_p0 = scmp.ne.s32.totalorder %s29_s25, %s1754_s26  ;;  %p1760_p2 = scmp.lt.s32.totalorder %s1754_s26, %s1754_s26 }
   0x7   :  { %p1761_p3 = por %p1760_p2, %p1759_p1 }
   0x9   :  { %p1762_p4 = pnand %p1761_p3, %p1755_p0 }
   0xb   :  { %1765 = shalt.err (!%p1762_p4)
}
   0xc   :  { %s1813_s27 = smov 128   ;;  %s1814_s28 = smov 8  }
   0xd   :  { %34 = dma.hbm_to_vmem [thread:$0]  %s2173_s4, 2048, %s29_s25, [#allocation3], %s1813_s27, %s1813_s27, %s1814_s28  }
   0xe   :  { %s1815_s8 = smov [#allocation5]  }
   0xf   :  { %s40_s9 = sshll.u32 %s1815_s8, 4  ;;  %s41_s9 = int_to_ptr.vmem [resolvable:$true] %s40_s9 }
  0x10   :  { %s1774_s10 = scalar_lea.vmem %s41_s9, 1024  ;;  %p1779_p6 = scmp.lt.s32.totalorder %s41_s9, %s41_s9 }
  0x11   :  { %p1775_p5 = scmp.ne.s32.totalorder %s41_s9, %s1774_s10  ;;  %p1780_p7 = scmp.lt.s32.totalorder %s1774_s10, %s1774_s10 }
  0x13   :  { %p1781_p8 = por %p1780_p7, %p1779_p6 }
  0x15   :  { %p1782_p9 = pnand %p1781_p8, %p1775_p5 }
  0x17   :  { %1785 = shalt.err (!%p1782_p9)
}
  0x18   :  { %46 = dma.hbm_to_vmem [thread:$0]  %s2174_s5, 1024, %s41_s9, [#allocation6], %s1813_s27, %s1813_s27, %s1814_s28  }
  0x19   :  { %1806 = dma.done.wait [#allocation3], 2048  }
  0x1a   :  { %1807 = vsyncadd [#allocation3], 4294965248 }
  0x1b   :  { %1808 = dma.done.wait [#allocation6], 1024  }
  0x1c   :  { %1809 = vsyncadd [#allocation6], 4294966272  ;;  %vm74_vm0 = vcmask 130048   ;;  %v1873_v0 = vld [vmem:[%s2169_s0 + $0x8] sm:$0xff]  ;;  %v1878_v1 = vld [vmem:[%s2169_s0] sm:$0xff]  ;;  %vm320_vm1 = vcmask 261120  }
  0x1d   :  { %v72_v2 = vld [vmem:[%s2170_s1] sm:$0xff]  ;;  %1527 = vmatprep.subr.mxu0 %v1873_v0  ;;  %v73_v3 = vld [vmem:[%s2170_s1 + $0x8] sm:$0xff]  ;;  %v1914_v8 = vld [vmem:[%s2171_s2 + $0x10] sm:$0xff]  ;;  %vm261_vm2 = vcmask 523264  }
  0x1e   :  { %1531 = vmatprep.mubr.msk.f32.mxu0 %vm74_vm0, %v72_v2  ;;  %1528 = vmatpush3.msra.mxu0 %v1873_v0  ;;  %v1895_v4 = vld [vmem:[%s2171_s2] sm:$0xff]  ;;  %v1908_v7 = vld [vmem:[%s2171_s2 + $0x8] sm:$0xff]  ;;  %v1924_v9 = vld [vmem:[%s2171_s2 + $0x18] sm:$0xff] }
  0x1f   :  { %1529 = vmatprep.subr.mxu0 %v1878_v1  ;;  %v1931_v10 = vld [vmem:[%s2172_s3] sm:$0xff]  ;;  %v409_v11 = vld [vmem:[#allocation2 + $0x38] sm:$0xff]  ;;  %v408_v12 = vld [vmem:[#allocation2 + $0x30] sm:$0xff] }
  0x20   :  { %1530 = vmatpush3.msra.mxu0 %v1878_v1  ;;  %1555 = vmatprep.subr.mxu1 %v409_v11  ;;  %v407_v13 = vld [vmem:[#allocation2 + $0x28] sm:$0xff]  ;;  %v406_v14 = vld [vmem:[#allocation2 + $0x20] sm:$0xff]  ;;  %v405_v15 = vld [vmem:[#allocation2 + $0x18] sm:$0xff] }
  0x21   :  { %1532 = vmatmul.mubr.msk.f32.vlgmr.msra.gmra.mxu0 %vm74_vm0, %v73_v3  ;;  %1556 = vmatpush3.msra.mxu1 %v409_v11  ;;  %v404_v16 = vld [vmem:[#allocation2 + $0x10] sm:$0xff] }
  0x22   :  { %1538 = vmatprep.mubr.msk.f32.mxu0 %vm74_vm0, %v1895_v4  ;;  %1557 = vmatprep.subr.mxu1 %v408_v12 }
  0x23   :  { %1558 = vmatpush3.msra.mxu1 %v408_v12 }
  0x24   :  { %1559 = vmatprep.subr.mxu1 %v407_v13 }
  0x25   :  { %1560 = vmatpush3.msra.mxu1 %v407_v13 }
  0x26   :  { %1561 = vmatprep.subr.mxu1 %v406_v14 }
  0x27   :  { %1562 = vmatpush3.msra.mxu1 %v406_v14  ;;  %v1816_v14 = vmov 0.0  }
  0x28   :  { %1563 = vmatprep.subr.mxu1 %v405_v15 }
  0x29   :  { %1564 = vmatpush3.msra.mxu1 %v405_v15 }
  0x2a   :  { %1565 = vmatprep.subr.mxu1 %v404_v16 }
  0x2b   :  { %1566 = vmatpush3.msra.mxu1 %v404_v16 }
  0xe1   :  { %v1899_v5 = vpop.f32.mrf.mxu0 }
  0xe2   :  { %1534 = vmatprep.subr.mxu0 %v1899_v5 }
  0xe3   :  { %v1902_v6 = vpop.f32.mrf.mxu0  ;;  %1535 = vmatpush3.msra.mxu0 %v1899_v5 }
  0xe4   :  { %1536 = vmatprep.subr.mxu0 %v1902_v6 }
  0xe5   :  { %1537 = vmatpush3.msra.mxu0 %v1902_v6 }
  0xe6   :  { %1539 = vmatmul.mubr.msk.f32.vlgmr.msra.gmra.mxu0 %vm74_vm0, %v1908_v7 }
  0xe7   :  { %1541 = vmatprep.mubr.msk.f32.mxu0 %vm74_vm0, %v1914_v8 }
  0xea   :  { %1542 = vmatmul.mubr.msk.f32.gmra.mxu0 %vm74_vm0, %v1924_v9 }
  0xeb   :  { %1552 = vmatprep.mubr.msk.f32.mxu0 %vm320_vm1, %v1931_v10 }
 0x1a6   :  { %v1935_v17 = vpop.f32.mrf.mxu0 }
 0x1a7   :  { %v256_v20 = vmul.f32 %v1935_v17, %v1935_v17 }
 0x1a8   :  { %v1937_v18 = vpop.f32.mrf.mxu0 }
 0x1a9   :  { %v255_v23 = vmul.f32 %v1937_v18, %v1937_v18 }
 0x1aa   :  { %v1543_v19 = vpop.f32.mrf.mxu0 }
 0x1ab   :  { %v258_v21 = vmul.f32 %v1543_v19, %v1543_v19 }
 0x1ac   :  { %v246_v22 = vpop.f32.mrf.mxu0 }
 0x1ad   :  { %v260_v24 = vadd.f32 %v258_v21, %v256_v20  ;;  %v257_v25 = vmul.f32 %v246_v22, %v246_v22 }
 0x1af   :  { %v259_v26 = vadd.f32 %v257_v25, %v255_v23  ;;  %v263_v27 = vsel %vm261_vm2, %v260_v24, -inf }
 0x1b1   :  { %v262_v28 = vsel %vm261_vm2, %v259_v26, -inf }
 0x1b2   :  { %v264_v29 = vmax.f32 %v262_v28, %v263_v27  ;;  %v1973_v27 = vld [vmem:[#allocation5 + $0x20] sm:$0xff] }
 0x1b4   :  { %v265_v30 = vrot.slane %v264_v29, 4 }
 0x1b6   :  { %v266_v31 = vmax.f32 %v264_v29, %v265_v30  ;;  %v1988_v30 = vld [vmem:[#allocation5 + $0x18] sm:$0xff] }
 0x1b8   :  { %v267_v32 = vrot.slane %v266_v31, 2 }
 0x1ba   :  { %v268_v33 = vmax.f32 %v266_v31, %v267_v32  ;;  %v1993_v31 = vld [vmem:[#allocation5 + $0x10] sm:$0xff]  ;;  %v1999_v32 = vld [vmem:[#allocation5 + $0x8] sm:$0xff] }
 0x1bc   :  { %v269_v34 = vrot.slane %v268_v33, 1 }
 0x1be   :  { %v270_v35 = vmax.f32 %v268_v33, %v269_v34  ;;  %v2005_v33 = vld [vmem:[#allocation5] sm:$0xff]  ;;  %v410_v34 = vlaneseq }
 0x1c0   :  { %vm271_vm3 = vcmp.ge.f32.partialorder %v259_v26, %v270_v35  ;;  %vm272_vm4 = vcmp.ge.f32.partialorder %v260_v24, %v270_v35  ;;  %v2012_v35 = vshrl.u32 %v410_v34, 7 }
 0x1c1   :  { %v273_v36 = vsel %vm271_vm3, -inf, %v259_v26  ;;  %v274_v37 = vsel %vm272_vm4, -inf, %v260_v24 }
 0x1c2   :  { %v275_v38 = vsel %vm261_vm2, %v273_v36, -inf  ;;  %v276_v39 = vsel %vm261_vm2, %v274_v37, -inf }
 0x1c3   :  { %v277_v40 = vmax.f32 %v275_v38, %v276_v39 }
 0x1c5   :  { %v278_v41 = vrot.slane %v277_v40, 4 }
 0x1c7   :  { %v279_v42 = vmax.f32 %v277_v40, %v278_v41 }
 0x1c9   :  { %v280_v43 = vrot.slane %v279_v42, 2 }
 0x1cb   :  { %v281_v44 = vmax.f32 %v279_v42, %v280_v43 }
 0x1cd   :  { %v282_v45 = vrot.slane %v281_v44, 1 }
 0x1cf   :  { %v283_v46 = vmax.f32 %v281_v44, %v282_v45 }
 0x1d1   :  { %vm284_vm5 = vcmp.ge.f32.partialorder %v273_v36, %v283_v46  ;;  %vm285_vm6 = vcmp.ge.f32.partialorder %v274_v37, %v283_v46 }
 0x1d2   :  { %v286_v47 = vsel %vm284_vm5, -inf, %v273_v36  ;;  %v287_v48 = vsel %vm285_vm6, -inf, %v274_v37  ;;  %v412_v36 = vsub.s32 0, %v2012_v35  ;;  %v2018_v37 = vld [vmem:[%s2175_s6] sm:$0xff]  ;;  %s1817_s6 = smov [#allocation7]  }
 0x1d3   :  { %v288_v49 = vsel %vm261_vm2, %v286_v47, -inf  ;;  %v289_v50 = vsel %vm261_vm2, %v287_v48, -inf  ;;  %s1372_s8 = sshll.u32 %s1817_s6, 4  ;;  %s1373_s8 = int_to_ptr.vmem [resolvable:$true] %s1372_s8 }
 0x1d4   :  { %v290_v51 = vmax.f32 %v288_v49, %v289_v50  ;;  %v413_v38 = vrot.slane %v2018_v37, %v412_v36  ;;  %s1786_s9 = scalar_lea.vmem %s1373_s8, 256  ;;  %p1791_p11 = scmp.lt.s32.totalorder %s1373_s8, %s1373_s8 }
 0x1d5   :  { %p1787_p10 = scmp.ne.s32.totalorder %s1373_s8, %s1786_s9  ;;  %p1792_p12 = scmp.lt.s32.totalorder %s1786_s9, %s1786_s9 }
 0x1d6   :  { %v291_v52 = vrot.slane %v290_v51, 4 }
 0x1d7   :  { %p1793_p13 = por %p1792_p12, %p1791_p11 }
 0x1d8   :  { %v292_v53 = vmax.f32 %v290_v51, %v291_v52 }
 0x1d9   :  { %p1794_p0 = pnand %p1793_p13, %p1787_p10 }
 0x1da   :  { %v293_v54 = vrot.slane %v292_v53, 2 }
 0x1dc   :  { %v294_v55 = vmax.f32 %v292_v53, %v293_v54 }
 0x1de   :  { %v295_v56 = vrot.slane %v294_v55, 1 }
 0x1e0   :  { %v296_v57 = vmax.f32 %v294_v55, %v295_v56  ;;  %v669_v55 = vsub.s32 1, %v2012_v35 }
 0x1e2   :  { %vm297_vm7 = vcmp.ge.f32.partialorder %v286_v47, %v296_v57  ;;  %vm298_vm8 = vcmp.ge.f32.partialorder %v287_v48, %v296_v57  ;;  %v670_v56 = vrot.slane %v2018_v37, %v669_v55 }
 0x1e3   :  { %v299_v58 = vsel %vm297_vm7, -inf, %v286_v47  ;;  %v300_v59 = vsel %vm298_vm8, -inf, %v287_v48 }
 0x1e4   :  { %v301_v60 = vsel %vm261_vm2, %v299_v58, -inf  ;;  %v302_v61 = vsel %vm261_vm2, %v300_v59, -inf }
 0x1e5   :  { %v303_v62 = vmax.f32 %v301_v60, %v302_v61 }
 0x1e7   :  { %v304_v63 = vrot.slane %v303_v62, 4 }
 0x1e9   :  { %v305_v2 = vmax.f32 %v303_v62, %v304_v63 }
 0x1eb   :  { %v306_v3 = vrot.slane %v305_v2, 2 }
 0x1ed   :  { %v307_v11 = vmax.f32 %v305_v2, %v306_v3 }
 0x1ef   :  { %v308_v12 = vrot.slane %v307_v11, 1 }
 0x1f1   :  { %v309_v13 = vmax.f32 %v307_v11, %v308_v12  ;;  %v911_v11 = vld [vmem:[#allocation2 + $0x78] sm:$0xff]  ;;  %v910_v12 = vld [vmem:[#allocation2 + $0x70] sm:$0xff] }
 0x1f3   :  { %vm310_vm9 = vcmp.ge.f32.partialorder %v259_v26, %v309_v13  ;;  %vm311_vm10 = vcmp.ge.f32.partialorder %v260_v24, %v309_v13  ;;  %v1958_v24 = vld [vmem:[%s2172_s3 + $0x8] sm:$0xff] }
 0x1f4   :  { %v1391_v15 = vsel %vm310_vm9, 1.0, %v1816_v14  ;;  %v1392_v16 = vsel %vm311_vm10, 1.0, %v1816_v14  ;;  %v1969_v26 = vld [vmem:[#allocation5 + $0x28] sm:$0xff] }
 0x1f5   :  { %v319_v20 = vmul.f32 %v1543_v19, %v1392_v16  ;;  %v318_v21 = vmul.f32 %v1391_v15, %v246_v22  ;;  %v317_v23 = vmul.f32 %v1935_v17, %v1392_v16  ;;  %v316_v25 = vmul.f32 %v1391_v15, %v1937_v18  ;;  %v403_v19 = vld [vmem:[#allocation2 + $0x8] sm:$0xff]  ;;  %v402_v22 = vld [vmem:[#allocation2] sm:$0xff]  ;;  %v1962_v17 = vld [vmem:[#allocation5 + $0x38] sm:$0xff] }
 0x1f6   :  { %1567 = vmatprep.subr.mxu1 %v403_v19  ;;  %v1964_v18 = vld [vmem:[#allocation5 + $0x30] sm:$0xff]  ;;  %v909_v13 = vld [vmem:[#allocation2 + $0x68] sm:$0xff]  ;;  %v908_v15 = vld [vmem:[#allocation2 + $0x60] sm:$0xff] }
 0x1f7   :  { %1544 = vmatprep.subr.mxu0 %v319_v20  ;;  %1568 = vmatpush3.msra.mxu1 %v403_v19 }
 0x1f8   :  { %1545 = vmatpush3.msra.mxu0 %v319_v20  ;;  %1569 = vmatprep.subr.mxu1 %v402_v22 }
 0x1f9   :  { %1546 = vmatprep.subr.mxu0 %v318_v21  ;;  %1570 = vmatpush3.msra.mxu1 %v402_v22 }
 0x1fa   :  { %1547 = vmatpush3.msra.mxu0 %v318_v21  ;;  %1593 = vmatprep.subr.mxu1 %v1962_v17 }
 0x1fb   :  { %1548 = vmatprep.subr.mxu0 %v317_v23 }
 0x1fc   :  { %1549 = vmatpush3.msra.mxu0 %v317_v23 }
 0x1fd   :  { %1550 = vmatprep.subr.mxu0 %v316_v25 }
 0x1fe   :  { %1551 = vmatpush3.msra.mxu0 %v316_v25 }
 0x1ff   :  { %1553 = vmatmul.mubr.msk.f32.vlgmr.msra.gmra.mxu0 %vm320_vm1, %v1958_v24  ;;  %1574 = vmatprep.subr.mxu0 %v1962_v17 }
 0x200   :  { %1575 = vmatpush3.msra.mxu0 %v1962_v17 }
 0x201   :  { %1576 = vmatprep.subr.mxu0 %v1964_v18 }
 0x202   :  { %1577 = vmatpush3.msra.mxu0 %v1964_v18 }
 0x203   :  { %1578 = vmatprep.subr.mxu0 %v1969_v26 }
 0x204   :  { %1579 = vmatpush3.msra.mxu0 %v1969_v26 }
 0x205   :  { %1580 = vmatprep.subr.mxu0 %v1973_v27 }
 0x206   :  { %1581 = vmatpush3.msra.mxu0 %v1973_v27 }
 0x207   :  { %1582 = vmatprep.subr.mxu0 %v1988_v30 }
 0x208   :  { %1583 = vmatpush3.msra.mxu0 %v1988_v30 }
 0x209   :  { %1584 = vmatprep.subr.mxu0 %v1993_v31 }
 0x20a   :  { %1585 = vmatpush3.msra.mxu0 %v1993_v31 }
 0x20b   :  { %1586 = vmatprep.subr.mxu0 %v1999_v32 }
 0x20c   :  { %1587 = vmatpush3.msra.mxu0 %v1999_v32 }
 0x20d   :  { %1588 = vmatprep.subr.mxu0 %v2005_v33 }
 0x20e   :  { %1589 = vmatpush3.msra.mxu0 %v2005_v33 }
 0x2bf   :  { %v1554_v28 = vpop.f32.mrf.mxu0 }
 0x2c1   :  { %v393_v29 = vpop.f32.mrf.mxu0 }
 0x2c2   :  { %1571 = vmatprep.mubr.msk.f32.mxu1 %vm261_vm2, %v393_v29 }
 0x2c3   :  { %1572 = vmatmul.mubr.msk.f32.vlgmr.msra.gmra.mxu1 %vm261_vm2, %v1554_v28 }
 0x2c4   :  { %1594 = vmatpush3.msra.mxu1 %v1962_v17 }
 0x2c5   :  { %1595 = vmatprep.subr.mxu1 %v1964_v18 }
 0x2c6   :  { %1596 = vmatpush3.msra.mxu1 %v1964_v18 }
 0x2c7   :  { %1597 = vmatprep.subr.mxu1 %v1969_v26 }
 0x2c8   :  { %1598 = vmatpush3.msra.mxu1 %v1969_v26 }
 0x2c9   :  { %1599 = vmatprep.subr.mxu1 %v1973_v27 }
 0x2ca   :  { %1600 = vmatpush3.msra.mxu1 %v1973_v27 }
 0x2cb   :  { %1601 = vmatprep.subr.mxu1 %v1988_v30 }
 0x2cc   :  { %1602 = vmatpush3.msra.mxu1 %v1988_v30 }
 0x2cd   :  { %1603 = vmatprep.subr.mxu1 %v1993_v31 }
 0x2ce   :  { %1604 = vmatpush3.msra.mxu1 %v1993_v31 }
 0x2cf   :  { %1605 = vmatprep.subr.mxu1 %v1999_v32 }
 0x2d0   :  { %1606 = vmatpush3.msra.mxu1 %v1999_v32 }
 0x2d1   :  { %1607 = vmatprep.subr.mxu1 %v2005_v33 }
 0x2d2   :  { %1608 = vmatpush3.msra.mxu1 %v2005_v33 }
 0x2d3   :  { %1633 = vmatprep.subr.mxu1 %v911_v11 }
 0x383   :  { %v1573_v39 = vpop.f32.mrf.mxu1 }
 0x384   :  { %v492_v40 = vadd.f32 %v1573_v39, %v413_v38 }
 0x385   :  { %v486_v41 = vpop.f32.mrf.mxu1 }
 0x386   :  { %v487_v42 = vadd.f32 %v486_v41, %v413_v38  ;;  %v496_v44 = vadd.f32 %v1899_v5, %v492_v40 }
 0x388   :  { %v495_v43 = vadd.f32 %v487_v42, %v1902_v6 }
 0x38a   :  { %1590 = vmatprep.mubr.msk.f32.mxu0 %vm261_vm2, %v495_v43 }
 0x38b   :  { %1591 = vmatmul.mubr.msk.f32.vlgmr.msra.gmra.mxu0 %vm261_vm2, %v496_v44 }
 0x38c   :  { %1616 = vmatprep.mubr.msk.f32.mxu0 %vm74_vm0, %v1895_v4  ;;  %v675_v4 = vsub.s32 2, %v2012_v35 }
 0x38e   :  { %v676_v59 = vrot.slane %v2018_v37, %v675_v4 }
 0x44b   :  { %v1592_v45 = vpop.f32.mrf.mxu0 }
 0x44c   :  { %v579_v46 = vsub.f32 %v496_v44, %v1592_v45 }
 0x44d   :  { %v569_v47 = vpop.f32.mrf.mxu0 }
 0x44e   :  { %v578_v48 = vsub.f32 %v495_v43, %v569_v47  ;;  %v581_v50 = vmul.f32 %v579_v46, %v579_v46 }
 0x450   :  { %v580_v49 = vmul.f32 %v578_v48, %v578_v48 }
 0x452   :  { %1609 = vmatprep.mubr.msk.f32.mxu1 %vm261_vm2, %v580_v49 }
 0x453   :  { %1610 = vmatmul.mubr.msk.f32.vlgmr.msra.gmra.mxu1 %vm261_vm2, %v581_v50 }
 0x454   :  { %1634 = vmatpush3.msra.mxu1 %v911_v11 }
 0x455   :  { %1635 = vmatprep.subr.mxu1 %v910_v12 }
 0x456   :  { %1636 = vmatpush3.msra.mxu1 %v910_v12 }
 0x457   :  { %1637 = vmatprep.subr.mxu1 %v909_v13 }
 0x458   :  { %1638 = vmatpush3.msra.mxu1 %v909_v13 }
 0x459   :  { %1639 = vmatprep.subr.mxu1 %v908_v15 }
 0x45a   :  { %1640 = vmatpush3.msra.mxu1 %v908_v15 }
 0x513   :  { %v1611_v51 = vpop.f32.mrf.mxu1 }
 0x514   :  { %v660_v52 = vadd.f32 1e-05, %v1611_v51 }
 0x515   :  { %v654_v53 = vpop.f32.mrf.mxu1 }
 0x516   :  { %1734 = vrsqrt.f32 %v660_v52  ;;  %v655_v54 = vadd.f32 1e-05, %v654_v53 }
 0x518   :  { %1736 = vrsqrt.f32 %v655_v54 }
 0x523   :  { %v1735_v57 = vpop.eup %1734 }
 0x524   :  { %v666_v58 = vmul.f32 %v1735_v57, %v579_v46 }
 0x525   :  { %v1737_v60 = vpop.eup %1736 }
 0x526   :  { %v672_v61 = vmul.f32 %v670_v56, %v666_v58  ;;  %v665_v62 = vmul.f32 %v1737_v60, %v578_v48 }
 0x528   :  { %v2033_v63 = vadd.f32 %v676_v59, %v672_v61  ;;  %v671_v2 = vmul.f32 %v670_v56, %v665_v62 }
 0x52a   :  { %1612 = vmatprep.subr.mxu0 %v2033_v63  ;;  %v2036_v3 = vadd.f32 %v676_v59, %v671_v2 }
 0x52b   :  { %1613 = vmatpush3.msra.mxu0 %v2033_v63 }
 0x52c   :  { %1614 = vmatprep.subr.mxu0 %v2036_v3 }
 0x52d   :  { %1615 = vmatpush3.msra.mxu0 %v2036_v3 }
 0x52e   :  { %1617 = vmatmul.mubr.msk.f32.vlgmr.msra.gmra.mxu0 %vm74_vm0, %v1908_v7  ;;  %v907_v7 = vld [vmem:[#allocation2 + $0x58] sm:$0xff] }
 0x52f   :  { %1619 = vmatprep.mubr.msk.f32.mxu0 %vm74_vm0, %v1914_v8  ;;  %v906_v8 = vld [vmem:[#allocation2 + $0x50] sm:$0xff]  ;;  %1641 = vmatprep.subr.mxu1 %v907_v7 }
 0x530   :  { %1642 = vmatpush3.msra.mxu1 %v907_v7 }
 0x531   :  { %1643 = vmatprep.subr.mxu1 %v906_v8 }
 0x532   :  { %1620 = vmatmul.mubr.msk.f32.gmra.mxu0 %vm74_vm0, %v1924_v9  ;;  %1644 = vmatpush3.msra.mxu1 %v906_v8 }
 0x533   :  { %1630 = vmatprep.mubr.msk.f32.mxu0 %vm320_vm1, %v1931_v10 }
 0x5ee   :  { %v2049_v9 = vpop.f32.mrf.mxu0 }
 0x5ef   :  { %v765_v20 = vmul.f32 %v2049_v9, %v2049_v9 }
 0x5f0   :  { %v2051_v10 = vpop.f32.mrf.mxu0 }
 0x5f1   :  { %v764_v25 = vmul.f32 %v2051_v10, %v2051_v10 }
 0x5f2   :  { %v1621_v16 = vpop.f32.mrf.mxu0 }
 0x5f3   :  { %v767_v21 = vmul.f32 %v1621_v16, %v1621_v16 }
 0x5f4   :  { %v755_v23 = vpop.f32.mrf.mxu0 }
 0x5f5   :  { %v769_v19 = vadd.f32 %v767_v21, %v765_v20  ;;  %v766_v22 = vmul.f32 %v755_v23, %v755_v23 }
 0x5f7   :  { %v768_v28 = vadd.f32 %v766_v22, %v764_v25  ;;  %v771_v29 = vsel %vm261_vm2, %v769_v19, -inf }
 0x5f9   :  { %v770_v34 = vsel %vm261_vm2, %v768_v28, -inf }
 0x5fa   :  { %v772_v36 = vmax.f32 %v770_v34, %v771_v29 }
 0x5fc   :  { %v773_v38 = vrot.slane %v772_v36, 4 }
 0x5fe   :  { %v774_v39 = vmax.f32 %v772_v36, %v773_v38 }
 0x600   :  { %v775_v40 = vrot.slane %v774_v39, 2 }
 0x602   :  { %v776_v41 = vmax.f32 %v774_v39, %v775_v40 }
 0x604   :  { %v777_v42 = vrot.slane %v776_v41, 1 }
 0x606   :  { %v778_v43 = vmax.f32 %v776_v41, %v777_v42 }
 0x608   :  { %vm779_vm11 = vcmp.ge.f32.partialorder %v768_v28, %v778_v43  ;;  %vm780_vm12 = vcmp.ge.f32.partialorder %v769_v19, %v778_v43 }
 0x609   :  { %v781_v44 = vsel %vm779_vm11, -inf, %v768_v28  ;;  %v782_v45 = vsel %vm780_vm12, -inf, %v769_v19 }
 0x60a   :  { %v783_v46 = vsel %vm261_vm2, %v781_v44, -inf  ;;  %v784_v47 = vsel %vm261_vm2, %v782_v45, -inf }
 0x60b   :  { %v785_v48 = vmax.f32 %v783_v46, %v784_v47 }
 0x60d   :  { %v786_v49 = vrot.slane %v785_v48, 4 }
 0x60f   :  { %v787_v50 = vmax.f32 %v785_v48, %v786_v49 }
 0x611   :  { %v788_v51 = vrot.slane %v787_v50, 2 }
 0x613   :  { %v789_v52 = vmax.f32 %v787_v50, %v788_v51  ;;  %v1177_v51 = vsub.s32 5, %v2012_v35 }
 0x615   :  { %v790_v53 = vrot.slane %v789_v52, 1 }
 0x617   :  { %v791_v54 = vmax.f32 %v789_v52, %v790_v53 }
 0x619   :  { %vm792_vm13 = vcmp.ge.f32.partialorder %v781_v44, %v791_v54  ;;  %vm793_vm14 = vcmp.ge.f32.partialorder %v782_v45, %v791_v54 }
 0x61a   :  { %v794_v55 = vsel %vm792_vm13, -inf, %v781_v44  ;;  %v795_v4 = vsel %vm793_vm14, -inf, %v782_v45 }
 0x61b   :  { %v796_v56 = vsel %vm261_vm2, %v794_v55, -inf  ;;  %v797_v57 = vsel %vm261_vm2, %v795_v4, -inf }
 0x61c   :  { %v798_v58 = vmax.f32 %v796_v56, %v797_v57  ;;  %v156_v57 = vsub.f32 %v1878_v1, %v1902_v6 }
 0x61e   :  { %v799_v59 = vrot.slane %v798_v58, 4 }
 0x620   :  { %v800_v60 = vmax.f32 %v798_v58, %v799_v59  ;;  %v157_v59 = vsub.f32 %v1873_v0, %v1899_v5  ;;  %v1355_v5 = vsub.s32 6, %v2012_v35 }
 0x622   :  { %v801_v61 = vrot.slane %v800_v60, 2 }
 0x624   :  { %v802_v62 = vmax.f32 %v800_v60, %v801_v61 }
 0x626   :  { %v803_v2 = vrot.slane %v802_v62, 1 }
 0x628   :  { %v804_v11 = vmax.f32 %v802_v62, %v803_v2 }
 0x62a   :  { %vm805_vm15 = vcmp.ge.f32.partialorder %v794_v55, %v804_v11  ;;  %vm806_vm0 = vcmp.ge.f32.partialorder %v795_v4, %v804_v11 }
 0x62b   :  { %v807_v12 = vsel %vm805_vm15, -inf, %v794_v55  ;;  %v808_v13 = vsel %vm806_vm0, -inf, %v795_v4 }
 0x62c   :  { %v809_v15 = vsel %vm261_vm2, %v807_v12, -inf  ;;  %v810_v7 = vsel %vm261_vm2, %v808_v13, -inf }
 0x62d   :  { %v811_v8 = vmax.f32 %v809_v15, %v810_v7 }
 0x62f   :  { %v812_v20 = vrot.slane %v811_v8, 4 }
 0x631   :  { %v813_v21 = vmax.f32 %v811_v8, %v812_v20  ;;  %v1361_v8 = vsub.s32 7, %v2012_v35  ;;  %v1356_v20 = vrot.slane %v2018_v37, %v1355_v5 }
 0x633   :  { %v814_v25 = vrot.slane %v813_v21, 2 }
 0x635   :  { %v815_v22 = vmax.f32 %v813_v21, %v814_v25 }
 0x637   :  { %v816_v29 = vrot.slane %v815_v22, 1 }
 0x639   :  { %v817_v34 = vmax.f32 %v815_v22, %v816_v29  ;;  %v1362_v22 = vrot.slane %v2018_v37, %v1361_v8 }
 0x63b   :  { %vm818_vm3 = vcmp.ge.f32.partialorder %v768_v28, %v817_v34  ;;  %vm819_vm4 = vcmp.ge.f32.partialorder %v769_v19, %v817_v34 }
 0x63c   :  { %v1405_v36 = vsel %vm818_vm3, 1.0, %v1816_v14  ;;  %v1406_v38 = vsel %vm819_vm4, 1.0, %v1816_v14  ;;  %v905_v14 = vld [vmem:[#allocation2 + $0x48] sm:$0xff] }
 0x63d   :  { %v827_v39 = vmul.f32 %v1621_v16, %v1406_v38  ;;  %v826_v40 = vmul.f32 %v1405_v36, %v755_v23  ;;  %v825_v41 = vmul.f32 %v2049_v9, %v1406_v38  ;;  %v824_v42 = vmul.f32 %v1405_v36, %v2051_v10  ;;  %1645 = vmatprep.subr.mxu1 %v905_v14 }
 0x63e   :  { %1646 = vmatpush3.msra.mxu1 %v905_v14  ;;  %v914_v16 = vsub.s32 3, %v2012_v35 }
 0x63f   :  { %1622 = vmatprep.subr.mxu0 %v827_v39 }
 0x640   :  { %1623 = vmatpush3.msra.mxu0 %v827_v39  ;;  %v915_v23 = vrot.slane %v2018_v37, %v914_v16 }
 0x641   :  { %1624 = vmatprep.subr.mxu0 %v826_v40 }
 0x642   :  { %1625 = vmatpush3.msra.mxu0 %v826_v40 }
 0x643   :  { %1626 = vmatprep.subr.mxu0 %v825_v41 }
 0x644   :  { %1627 = vmatpush3.msra.mxu0 %v825_v41 }
 0x645   :  { %1628 = vmatprep.subr.mxu0 %v824_v42 }
 0x646   :  { %1629 = vmatpush3.msra.mxu0 %v824_v42 }
 0x647   :  { %1631 = vmatmul.mubr.msk.f32.vlgmr.msra.gmra.mxu0 %vm320_vm1, %v1958_v24  ;;  %1652 = vmatprep.subr.mxu0 %v1962_v17  ;;  %v904_v24 = vld [vmem:[#allocation2 + $0x40] sm:$0xff] }
 0x648   :  { %1653 = vmatpush3.msra.mxu0 %v1962_v17  ;;  %1647 = vmatprep.subr.mxu1 %v904_v24 }
 0x649   :  { %1654 = vmatprep.subr.mxu0 %v1964_v18  ;;  %1648 = vmatpush3.msra.mxu1 %v904_v24 }
 0x64a   :  { %1655 = vmatpush3.msra.mxu0 %v1964_v18  ;;  %1671 = vmatprep.subr.mxu1 %v1962_v17 }
 0x64b   :  { %1656 = vmatprep.subr.mxu0 %v1969_v26 }
 0x64c   :  { %1657 = vmatpush3.msra.mxu0 %v1969_v26 }
 0x64d   :  { %1658 = vmatprep.subr.mxu0 %v1973_v27 }
 0x64e   :  { %1659 = vmatpush3.msra.mxu0 %v1973_v27 }
 0x64f   :  { %1660 = vmatprep.subr.mxu0 %v1988_v30 }
 0x650   :  { %1661 = vmatpush3.msra.mxu0 %v1988_v30 }
 0x651   :  { %1662 = vmatprep.subr.mxu0 %v1993_v31 }
 0x652   :  { %1663 = vmatpush3.msra.mxu0 %v1993_v31 }
 0x653   :  { %1664 = vmatprep.subr.mxu0 %v1999_v32 }
 0x654   :  { %1665 = vmatpush3.msra.mxu0 %v1999_v32 }
 0x655   :  { %1666 = vmatprep.subr.mxu0 %v2005_v33 }
 0x656   :  { %1667 = vmatpush3.msra.mxu0 %v2005_v33 }
 0x657   :  { %1690 = vmatprep.subr.mxu0 %v1962_v17 }
 0x707   :  { %v1632_v9 = vpop.f32.mrf.mxu0 }
 0x709   :  { %v894_v10 = vpop.f32.mrf.mxu0 }
 0x70a   :  { %1649 = vmatprep.mubr.msk.f32.mxu1 %vm261_vm2, %v894_v10 }
 0x70b   :  { %1650 = vmatmul.mubr.msk.f32.vlgmr.msra.gmra.mxu1 %vm261_vm2, %v1632_v9 }
 0x70c   :  { %1672 = vmatpush3.msra.mxu1 %v1962_v17 }
 0x70d   :  { %1673 = vmatprep.subr.mxu1 %v1964_v18 }
 0x70e   :  { %1674 = vmatpush3.msra.mxu1 %v1964_v18 }
 0x70f   :  { %1675 = vmatprep.subr.mxu1 %v1969_v26 }
 0x710   :  { %1676 = vmatpush3.msra.mxu1 %v1969_v26 }
 0x711   :  { %1677 = vmatprep.subr.mxu1 %v1973_v27 }
 0x712   :  { %1678 = vmatpush3.msra.mxu1 %v1973_v27 }
 0x713   :  { %1679 = vmatprep.subr.mxu1 %v1988_v30 }
 0x714   :  { %1680 = vmatpush3.msra.mxu1 %v1988_v30 }
 0x715   :  { %1681 = vmatprep.subr.mxu1 %v1993_v31 }
 0x716   :  { %1682 = vmatpush3.msra.mxu1 %v1993_v31 }
 0x717   :  { %1683 = vmatprep.subr.mxu1 %v1999_v32 }
 0x718   :  { %1684 = vmatpush3.msra.mxu1 %v1999_v32 }
 0x719   :  { %1685 = vmatprep.subr.mxu1 %v2005_v33 }
 0x71a   :  { %1686 = vmatpush3.msra.mxu1 %v2005_v33 }
 0x71b   :  { %1709 = vmatprep.subr.mxu1 %v1962_v17 }
 0x7cb   :  { %v1651_v19 = vpop.f32.mrf.mxu1 }
 0x7cc   :  { %v994_v28 = vadd.f32 %v1651_v19, %v915_v23 }
 0x7cd   :  { %v988_v43 = vpop.f32.mrf.mxu1 }
 0x7ce   :  { %v989_v44 = vadd.f32 %v988_v43, %v915_v23  ;;  %v998_v46 = vadd.f32 %v994_v28, %v2033_v63 }
 0x7d0   :  { %v997_v45 = vadd.f32 %v989_v44, %v2036_v3 }
 0x7d2   :  { %1668 = vmatprep.mubr.msk.f32.mxu0 %vm261_vm2, %v997_v45 }
 0x7d3   :  { %1669 = vmatmul.mubr.msk.f32.vlgmr.msra.gmra.mxu0 %vm261_vm2, %v998_v46 }
 0x7d4   :  { %1691 = vmatpush3.msra.mxu0 %v1962_v17 }
 0x7d5   :  { %1692 = vmatprep.subr.mxu0 %v1964_v18 }
 0x7d6   :  { %1693 = vmatpush3.msra.mxu0 %v1964_v18 }
 0x7d7   :  { %1694 = vmatprep.subr.mxu0 %v1969_v26 }
 0x7d8   :  { %1695 = vmatpush3.msra.mxu0 %v1969_v26 }
 0x7d9   :  { %1696 = vmatprep.subr.mxu0 %v1973_v27 }
 0x7da   :  { %1697 = vmatpush3.msra.mxu0 %v1973_v27 }
 0x7db   :  { %1698 = vmatprep.subr.mxu0 %v1988_v30 }
 0x7dc   :  { %1699 = vmatpush3.msra.mxu0 %v1988_v30 }
 0x7dd   :  { %1700 = vmatprep.subr.mxu0 %v1993_v31 }
 0x7de   :  { %1701 = vmatpush3.msra.mxu0 %v1993_v31 }
 0x7df   :  { %1702 = vmatprep.subr.mxu0 %v1999_v32 }
 0x7e0   :  { %1703 = vmatpush3.msra.mxu0 %v1999_v32 }
 0x7e1   :  { %1704 = vmatprep.subr.mxu0 %v2005_v33 }
 0x7e2   :  { %1705 = vmatpush3.msra.mxu0 %v2005_v33 }
 0x893   :  { %v1670_v63 = vpop.f32.mrf.mxu0 }
 0x894   :  { %v1081_v3 = vsub.f32 %v998_v46, %v1670_v63 }
 0x895   :  { %v1071_v47 = vpop.f32.mrf.mxu0 }
 0x896   :  { %v1080_v48 = vsub.f32 %v997_v45, %v1071_v47  ;;  %v1083_v50 = vmul.f32 %v1081_v3, %v1081_v3 }
 0x898   :  { %v1082_v49 = vmul.f32 %v1080_v48, %v1080_v48 }
 0x89a   :  { %1687 = vmatprep.mubr.msk.f32.mxu1 %vm261_vm2, %v1082_v49 }
 0x89b   :  { %1688 = vmatmul.mubr.msk.f32.vlgmr.msra.gmra.mxu1 %vm261_vm2, %v1083_v50 }
 0x89c   :  { %1710 = vmatpush3.msra.mxu1 %v1962_v17 }
 0x89d   :  { %1711 = vmatprep.subr.mxu1 %v1964_v18 }
 0x89e   :  { %1712 = vmatpush3.msra.mxu1 %v1964_v18 }
 0x89f   :  { %1713 = vmatprep.subr.mxu1 %v1969_v26 }
 0x8a0   :  { %1714 = vmatpush3.msra.mxu1 %v1969_v26 }
 0x8a1   :  { %1715 = vmatprep.subr.mxu1 %v1973_v27 }
 0x8a2   :  { %1716 = vmatpush3.msra.mxu1 %v1973_v27 }
 0x8a3   :  { %1717 = vmatprep.subr.mxu1 %v1988_v30 }
 0x8a4   :  { %1718 = vmatpush3.msra.mxu1 %v1988_v30  ;;  %v1171_v30 = vsub.s32 4, %v2012_v35 }
 0x8a5   :  { %1719 = vmatprep.subr.mxu1 %v1993_v31 }
 0x8a6   :  { %1720 = vmatpush3.msra.mxu1 %v1993_v31  ;;  %v1172_v31 = vrot.slane %v2018_v37, %v1171_v30 }
 0x8a7   :  { %1721 = vmatprep.subr.mxu1 %v1999_v32 }
 0x8a8   :  { %1722 = vmatpush3.msra.mxu1 %v1999_v32  ;;  %v1178_v32 = vrot.slane %v2018_v37, %v1177_v51 }
 0x8a9   :  { %1723 = vmatprep.subr.mxu1 %v2005_v33 }
 0x8aa   :  { %1724 = vmatpush3.msra.mxu1 %v2005_v33 }
 0x95b   :  { %v1689_v17 = vpop.f32.mrf.mxu1 }
 0x95c   :  { %v1162_v18 = vadd.f32 1e-05, %v1689_v17 }
 0x95d   :  { %v1156_v26 = vpop.f32.mrf.mxu1 }
 0x95e   :  { %1738 = vrsqrt.f32 %v1162_v18  ;;  %v1157_v27 = vadd.f32 1e-05, %v1156_v26 }
 0x960   :  { %1740 = vrsqrt.f32 %v1157_v27 }
 0x96b   :  { %v1739_v52 = vpop.eup %1738 }
 0x96c   :  { %v1168_v53 = vmul.f32 %v1739_v52, %v1081_v3 }
 0x96d   :  { %v1741_v54 = vpop.eup %1740 }
 0x96e   :  { %v1167_v55 = vmul.f32 %v1741_v54, %v1080_v48  ;;  %v1174_v4 = vmul.f32 %v1172_v31, %v1168_v53 }
 0x970   :  { %v1173_v33 = vmul.f32 %v1172_v31, %v1167_v55  ;;  %v1180_v56 = vadd.f32 %v1178_v32, %v1174_v4 }
 0x972   :  { %v1179_v58 = vadd.f32 %v1178_v32, %v1173_v33  ;;  %v1182_v61 = vadd.f32 %v1180_v56, %v157_v59 }
 0x974   :  { %v1181_v60 = vadd.f32 %v1179_v58, %v156_v57 }
 0x976   :  { %1706 = vmatprep.mubr.msk.f32.mxu0 %vm261_vm2, %v1181_v60 }
 0x977   :  { %1707 = vmatmul.mubr.msk.f32.vlgmr.msra.gmra.mxu0 %vm261_vm2, %v1182_v61 }
 0xa37   :  { %v1708_v62 = vpop.f32.mrf.mxu0 }
 0xa38   :  { %v1265_v2 = vsub.f32 %v1182_v61, %v1708_v62 }
 0xa39   :  { %v1255_v11 = vpop.f32.mrf.mxu0 }
 0xa3a   :  { %v1264_v12 = vsub.f32 %v1181_v60, %v1255_v11  ;;  %v1267_v15 = vmul.f32 %v1265_v2, %v1265_v2 }
 0xa3c   :  { %v1266_v13 = vmul.f32 %v1264_v12, %v1264_v12 }
 0xa3e   :  { %1725 = vmatprep.mubr.msk.f32.mxu1 %vm261_vm2, %v1266_v13 }
 0xa3f   :  { %1726 = vmatmul.mubr.msk.f32.vlgmr.msra.gmra.mxu1 %vm261_vm2, %v1267_v15 }
 0xaff   :  { %v1727_v1 = vpop.f32.mrf.mxu1 }
 0xb00   :  { %v1346_v6 = vadd.f32 1e-05, %v1727_v1 }
 0xb01   :  { %v1340_v7 = vpop.f32.mrf.mxu1 }
 0xb02   :  { %1742 = vrsqrt.f32 %v1346_v6  ;;  %v1341_v0 = vadd.f32 1e-05, %v1340_v7 }
 0xb04   :  { %1744 = vrsqrt.f32 %v1341_v0 }
 0xb0f   :  { %v1743_v21 = vpop.eup %1742 }
 0xb10   :  { %v1352_v25 = vmul.f32 %v1743_v21, %v1265_v2 }
 0xb11   :  { %v1745_v29 = vpop.eup %1744 }
 0xb12   :  { %v1351_v34 = vmul.f32 %v1745_v29, %v1264_v12  ;;  %v1358_v36 = vmul.f32 %v1356_v20, %v1352_v25 }
 0xb14   :  { %v1357_v38 = vmul.f32 %v1356_v20, %v1351_v34  ;;  %v1364_v39 = vadd.f32 %v1362_v22, %v1358_v36 }
 0xb16   :  { %v1363_v40 = vadd.f32 %v1362_v22, %v1357_v38  ;;  %1366 = vst.msk [vmem:[#allocation7 + $0x8] sm:$0xff] %vm261_vm2, %v1364_v39 }
 0xb18   :  { %1365 = vst.msk [vmem:[#allocation7] sm:$0xff] %vm261_vm2, %v1363_v40 }
 0xb19   :  { %1797 = shalt.err (!%p1794_p0)
}
 0xb1a   :  { %1378 = dma.vmem_to_hbm [thread:$0]  %s1373_s8, 256, %s2176_s7, [#allocation4], %s1813_s27, %s1813_s27, %s1814_s28  }
 0xb1b   :  { %1810 = dma.done.wait [#allocation4], 256  }
 0xb1c   :  { %1811 = vsyncadd [#allocation4], 4294967040 }
 0xb1d   :  { %1382 = vsyncpa [#allocation3], 1 }
 0xb1e   :  { %1383 = vsyncpa [#allocation6], 1 }
 0xb1f   :  { %1384 = vsyncpa [#allocation4], 1 }

</bundles_post_ra>
